<compile_context>
chip_gen: v6e
topology: v6e:2x2x1
jax: 0.10.0
libtpu: 0.0.40
codegen_flags: <defaults>
</compile_context>

<pallas_src>
import jax
import jax.numpy as jnp
from jax.experimental import pallas as pl
from jax.experimental.pallas import tpu as pltpu
from functools import reduce

LANES = 128
_DEFAULT_BLOCK_BYTES = 2 * 1024 * 1024   # v5e/v6e: already ~roofline at 2 MiB
_V7X_BLOCK_BYTES = 4 * 1024 * 1024       # v7x: bigger blocks amortize per-step overhead
_MIN_PIPELINE_BYTES = 512 * 1024         # below this: single block; above: force >=4 steps


def _sublane_multiple(dtype):
    """Native sublane packing multiple: 8 for 4-byte, 16 for 2-byte, 32 for 1-byte."""
    itemsize = jnp.dtype(dtype).itemsize
    return max(8, 8 * (4 // max(itemsize, 1)))


def _target_block_bytes():
    """Chip-aware block-size target.

    v7x has 64 MiB physical VMEM per TC (vs 128 MiB on v5e/v6e) and much faster
    HBM, so use ~4 MiB blocks there (4 buffers x 4 MiB = 16 MiB, comfortably
    inside its 32 MiB scoped-VMEM default). Keep 2 MiB on v5e/v6e so the
    double-buffered footprint stays at 8 MiB (safe under v5e's 16 MiB default).
    """
    try:
        info = pltpu.get_tpu_info()
        vmem = getattr(info, "vmem_capacity_bytes", None)
        if vmem is not None and vmem <= 64 * 1024 * 1024:
            return _V7X_BLOCK_BYTES
    except Exception:
        pass
    return _DEFAULT_BLOCK_BYTES


def _relu_kernel(x_ref, o_ref):
    # Single elementwise VPU max against a scalar zero — nothing else.
    o_ref[...] = jnp.maximum(x_ref[...], 0)


def _relu_2d(x2d, tile_rows):
    rows, lanes = x2d.shape
    itemsize = jnp.dtype(x2d.dtype).itemsize
    n = rows * lanes
    return pl.pallas_call(
        _relu_kernel,
        out_shape=jax.ShapeDtypeStruct((rows, lanes), x2d.dtype),
        grid_spec=pltpu.PrefetchScalarGridSpec(
            num_scalar_prefetch=0,
            grid=(pl.cdiv(rows, tile_rows),),
            in_specs=[pl.BlockSpec((tile_rows, lanes), lambda i: (i, 0))],
            out_specs=pl.BlockSpec((tile_rows, lanes), lambda i: (i, 0)),
        ),
        compiler_params=pltpu.CompilerParams(
            # Neutral on v5e/v6e (1 TC); lets v7x shard grid steps across TCs.
            # TODO(synk): verify in a profile that both v7x TCs are active;
            # if not, switch this axis to pltpu.CORE_PARALLEL.
            dimension_semantics=("parallel",),
        ),
        cost_estimate=pl.CostEstimate(
            flops=n, transcendentals=0, bytes_accessed=2 * n * itemsize),
    )(x2d)


def _choose_tile_rows(rows, dtype):
    """Pick a row tile: big enough to amortize per-step overhead, small enough
    that the grid has >= ~4 steps for DMA in/out overlap and TC sharding."""
    sub = _sublane_multiple(dtype)
    itemsize = jnp.dtype(dtype).itemsize
    total_bytes = rows * LANES * itemsize
    if total_bytes <= _MIN_PIPELINE_BYTES or rows <= 4 * sub:
        return rows  # single full-array block (any row count is legal)
    tr_cap = max(sub, (_target_block_bytes() // (LANES * itemsize)) // sub * sub)
    tr_quarter = max(sub, ((pl.cdiv(rows, 4) + sub - 1) // sub) * sub)
    return min(tr_cap, tr_quarter, rows)


def relu_pallas(x):
    """Elementwise ReLU matching torch's x.relu() for arbitrary-shaped x."""
    orig_shape = x.shape
    n = x.size
    if n == 0:
        return x
    dtype = x.dtype
    zero = jnp.zeros((), dtype=dtype)

    if n % LANES == 0:
        # Fast path: free contiguous reshape to a lane-dense (rows, 128) slab.
        rows = n // LANES
        tr = _choose_tile_rows(rows, dtype)
        out2d = _relu_2d(x.reshape(rows, LANES), tr)
        return out2d.reshape(orig_shape)

    # Ragged fallback: head/tail split (no pad + trailing-slice double copy).
    x_flat = jnp.ravel(x)
    head_n = (n // LANES) * LANES
    tail = jnp.maximum(x_flat[head_n:], zero)  # < 128 elems, dtype preserved
    if head_n == 0:
        return tail.reshape(orig_shape)
    rows = head_n // LANES
    tr = _choose_tile_rows(rows, dtype)
    head = _relu_2d(x_flat[:head_n].reshape(rows, LANES), tr).reshape(-1)
    return jnp.concatenate([head, tail]).reshape(orig_shape)


class ReLUPallas:
    """Mirror of the PyTorch ReLU module (deepz_lambda kept for parity, unused)."""

    def __init__(self, dims=None):
        self.dims = dims
        # torch.ones(dims) equivalent; not used in the forward pass.
        self.deepz_lambda = jnp.ones(dims, dtype=jnp.float32) if dims else None
        self.bounds = None

    def get_neurons(self):
        return reduce(lambda a, b: a * b, self.dims)

    def __call__(self, x, init_lambda=False):
        return relu_pallas(x)


if __name__ == "__main__":
    key = jax.random.PRNGKey(0)
    # NCHW conv-activation-like input (fast path: 2048 % 128 == 0).
    x = jax.random.normal(key, (2, 4, 16, 16), dtype=jnp.float32)

    mod = ReLUPallas(dims=(4, 16, 16))
    y = jax.block_until_ready(mod(x))
    ref = jnp.maximum(x, 0.0)
    assert y.shape == x.shape
    assert y.dtype == x.dtype
    assert jnp.allclose(y, ref), "mismatch vs reference ReLU (fast path)"

    # Multi-block path (> 0.5 MiB) to exercise the pipelined grid.
    x_big = jax.random.normal(jax.random.PRNGKey(3), (8, 16, 32, 32), dtype=jnp.float32)
    y_big = jax.block_until_ready(relu_pallas(x_big))
    assert jnp.allclose(y_big, jnp.maximum(x_big, 0.0)), "mismatch (multi-block path)"

    # Ragged fallback path: flat size (105) not a multiple of 128.
    x_odd = jax.random.normal(jax.random.PRNGKey(1), (3, 5, 7), dtype=jnp.float32)
    y_odd = jax.block_until_ready(relu_pallas(x_odd))
    assert y_odd.dtype == x_odd.dtype
    assert jnp.allclose(y_odd, jnp.maximum(x_odd, 0.0)), "mismatch (fallback path)"

    # Packed dtype path: bf16 with 16-row sublane alignment.
    x_bf16 = jax.random.normal(jax.random.PRNGKey(2), (4, 8, 16, 16), dtype=jnp.bfloat16)
    y_bf16 = jax.block_until_ready(relu_pallas(x_bf16))
    assert y_bf16.dtype == jnp.bfloat16
    assert jnp.allclose(y_bf16.astype(jnp.float32),
                        jnp.maximum(x_bf16, 0).astype(jnp.float32)), "mismatch (bf16)"

    print("KERNEL_OK")
</pallas_src>

<mosaic_0001>
module attributes {stable_mosaic.version = 11 : i64} {
  func.func @_relu_kernel(%arg0: i32, %arg1: memref<16x128xf32, #tpu.memory_space<vmem>>, %arg2: memref<16x128xf32, #tpu.memory_space<vmem>>) attributes {dimension_semantics = [#tpu.dimension_semantics<parallel>], iteration_bounds = array<i64: 1>, scalar_prefetch = 0 : i64, scratch_operands = 0 : i64, tpu.core_type = #tpu.core_type<tc>, window_params = [{transform_indices = @transform_0, window_bounds = array<i64: 16, 128>}, {transform_indices = @transform_1, window_bounds = array<i64: 16, 128>}]} {
    %c0 = arith.constant 0 : index
    %c0_0 = arith.constant 0 : index
    %0 = vector.load %arg1[%c0, %c0_0] : memref<16x128xf32, #tpu.memory_space<vmem>>, vector<16x128xf32>
    %cst = arith.constant 0.000000e+00 : f32
    %1 = vector.broadcast %cst : f32 to vector<16x128xf32>
    %2 = arith.maximumf %0, %1 : vector<16x128xf32>
    %c0_1 = arith.constant 0 : index
    %c0_2 = arith.constant 0 : index
    %3 = vector.load %arg2[%c0_1, %c0_2] : memref<16x128xf32, #tpu.memory_space<vmem>>, vector<16x128xf32>
    tpu.vector_store %arg2[%c0_1, %c0_2], %2 {strides = array<i32>} : memref<16x128xf32, #tpu.memory_space<vmem>>, vector<16x128xf32>,
    return
  }
  func.func @transform_0(%arg0: i32) -> (i32, i32) {
    %c0_i32 = arith.constant 0 : i32
    %c0_i32_0 = arith.constant 0 : i32
    return %arg0, %c0_i32 : i32, i32
  }
  func.func @transform_1(%arg0: i32) -> (i32, i32) {
    %c0_i32 = arith.constant 0 : i32
    %c0_i32_0 = arith.constant 0 : i32
    return %arg0, %c0_i32 : i32, i32
  }
}

</mosaic_0001>

<bundles_post_ra>
// kernel: tpu_custom_call.1
= control target key start
LH: loop header
LB: loop body
LE: loop exit
PB: predicated region body
PF: predicated region fallthrough
CT: control target
= control target key end

     0   :  { %6 = vsyncpa [#allocation3], 0  ;;  %s114_s0 = inlined_call_operand.hbm [shape: f32[16,128], index: 0, kind: input, shape index: {}]   ;;  %s115_s1 = inlined_call_operand.hbm [shape: f32[16,128], index: 1, kind: output, shape index: {}]  }
   0x1   :  { %7 = vsyncpa [#allocation4], 0  ;;  %s94_s6 = smov [#allocation2]  }
   0x2   :  { %s13_s7 = sshll.u32 %s94_s6, 4  ;;  %s14_s7 = int_to_ptr.vmem [resolvable:$true] %s13_s7 }
   0x3   :  { %s58_s8 = scalar_lea.vmem %s14_s7, 256  ;;  %p63_p1 = scmp.lt.s32.totalorder %s14_s7, %s14_s7 }
   0x4   :  { %p59_p0 = scmp.ne.s32.totalorder %s14_s7, %s58_s8  ;;  %p64_p2 = scmp.lt.s32.totalorder %s58_s8, %s58_s8 }
   0x6   :  { %p65_p3 = por %p64_p2, %p63_p1 }
   0x8   :  { %p66_p4 = pnand %p65_p3, %p59_p0 }
   0xa   :  { %69 = shalt.err (!%p66_p4)
}
   0xb   :  { %s95_s9 = smov 128   ;;  %s96_s10 = smov 8  }
   0xc   :  { %19 = dma.hbm_to_vmem [thread:$0]  %s114_s0, 256, %s14_s7, [#allocation3], %s95_s9, %s95_s9, %s96_s10  }
   0xd   :  { %90 = dma.done.wait [#allocation3], 256  }
   0xe   :  { %91 = vsyncadd [#allocation3], 4294967040  ;;  %s97_s13 = smov [#allocation5]   ;;  %v23_v0 = vld [vmem:[#allocation2] sm:$0xff]  ;;  %v24_v1 = vld [vmem:[#allocation2 + $0x8] sm:$0xff] }
   0xf   :  { %s34_s14 = sshll.u32 %s97_s13, 4  ;;  %v25_v2 = vmax.f32 %v23_v0, 0.0  ;;  %v26_v3 = vmax.f32 %v24_v1, 0.0  ;;  %s35_s14 = int_to_ptr.vmem [resolvable:$true] %s34_s14 }
  0x10   :  { %s70_s15 = scalar_lea.vmem %s35_s14, 256  ;;  %p75_p6 = scmp.lt.s32.totalorder %s35_s14, %s35_s14 }
  0x11   :  { %27 = vst [vmem:[#allocation5] sm:$0xff] %v25_v2  ;;  %28 = vst [vmem:[#allocation5 + $0x8] sm:$0xff] %v26_v3  ;;  %p71_p5 = scmp.ne.s32.totalorder %s35_s14, %s70_s15  ;;  %p76_p7 = scmp.lt.s32.totalorder %s70_s15, %s70_s15 }
  0x13   :  { %p77_p8 = por %p76_p7, %p75_p6 }
  0x15   :  { %p78_p9 = pnand %p77_p8, %p71_p5 }
  0x17   :  { %81 = shalt.err (!%p78_p9)
}
  0x18   :  { %40 = dma.vmem_to_hbm [thread:$0]  %s35_s14, 256, %s115_s1, [#allocation4], %s95_s9, %s95_s9, %s96_s10  }
  0x19   :  { %92 = dma.done.wait [#allocation4], 256  }
  0x1a   :  { %93 = vsyncadd [#allocation4], 4294967040 }
  0x1b   :  { %44 = vsyncpa [#allocation3], 1 }
  0x1c   :  { %45 = vsyncpa [#allocation4], 1 }

</bundles_post_ra>
